<compile_context>
chip_gen: v7x
topology: tpu7x:2x2x1
jax: 0.10.0
libtpu: 0.0.40
codegen_flags: <defaults>
</compile_context>

<pallas_src>
import jax
import jax.numpy as jnp
from jax.experimental import pallas as pl
from jax.experimental.pallas import tpu as pltpu


def _policy_kernel(x_ref, w1_ref, b1_ref, wd_ref, bd_ref, out_ref):
    # x_ref : (4, TB)    feature-major batch tile
    # w1_ref: (128, 4)   torch-layout affine1 weight (VMEM-resident)
    # b1_ref: (128, 1)   affine1 bias (broadcast over lanes)
    # wd_ref: (1, 128)   w2[0,:] - w2[1,:]
    # bd_ref: (1, 1)     b2[0] - b2[1]      (SMEM scalar)
    # out_ref: (2, TB)   [p0; p1] lane-dense output tile

    x = x_ref[...]            # (4, TB)
    w1 = w1_ref[...]          # (128, 4)

    # affine1 as 4 unrolled VPU broadcast multiply-adds (keeps MXU out of the
    # K=4 contraction): h[j,b] = b1[j] + sum_k w1[j,k] * x[k,b]
    h = b1_ref[...] + w1[:, 0:1] * x[0:1, :]
    for k in range(1, 4):     # trace-time unrolled
        h = h + w1[:, k:k + 1] * x[k:k + 1, :]

    # dropout(p=0.6) in eval mode == identity; then ReLU (VPU).
    h = jnp.maximum(h, 0.0)

    # 2-class softmax == sigmoid of the logit difference (K=128 stays on MXU):
    #   softmax([s0, s1]) = [sigmoid(s0 - s1), 1 - sigmoid(s0 - s1)]
    s = jnp.dot(wd_ref[...], h,
                preferred_element_type=jnp.float32) + bd_ref[0, 0]   # (1, TB)
    p0 = jax.nn.sigmoid(s)                                           # EUP

    # Single lane-dense store of both probability rows.
    out_ref[...] = jnp.concatenate([p0, 1.0 - p0], axis=0)


def _round_up(n, m):
    return ((n + m - 1) // m) * m


def _pick_tile_b(batch):
    """Adaptive batch tile: 128 for tiny batches, >=2 tiles (megacore) capped
    at 8192 lanes for large batches."""
    if batch <= 128:
        return 128
    half = (batch + 1) // 2
    return min(8192, _round_up(half, 128))


def policy_forward_feature_major(x_t, w1, b1, w2, b2, *, tile_b=None):
    """Feature-major forward: x_t (4, B) f32 -> (2, B) f32 probs [p0; p1].

    Avoids the wrapper transpose/pad HBM round trips when the caller keeps
    observations feature-major end-to-end.
    """
    B = x_t.shape[1]
    if tile_b is None:
        tile_b = _pick_tile_b(B)
    num_tiles = -(-B // tile_b)
    pb = num_tiles * tile_b

    if pb != B:
        x_t = jnp.pad(x_t, ((0, 0), (0, pb - B)))

    b1_col = b1.reshape(128, 1)                    # (128, 1)
    wd = (w2[0, :] - w2[1, :]).reshape(1, 128)     # (1, 128)
    bd = (b2[0] - b2[1]).reshape(1, 1)             # (1, 1) -> SMEM scalar

    cost = pl.CostEstimate(
        flops=pb * (2 * 4 * 128 + 2 * 128 + 8),
        transcendentals=pb,
        bytes_accessed=4 * (4 * pb + 2 * pb + 128 * 4 + 128 + 128 + 1),
    )

    out_t = pl.pallas_call(
        _policy_kernel,
        out_shape=jax.ShapeDtypeStruct((2, pb), jnp.float32),
        grid=(num_tiles,),
        in_specs=[
            pl.BlockSpec((4, tile_b), lambda i: (0, i)),          # x tile
            pl.BlockSpec((128, 4), lambda i: (0, 0)),             # w1 (resident)
            pl.BlockSpec((128, 1), lambda i: (0, 0)),             # b1 (resident)
            pl.BlockSpec((1, 128), lambda i: (0, 0)),             # wd (resident)
            pl.BlockSpec(memory_space=pltpu.MemorySpace.SMEM),    # bd scalar
        ],
        out_specs=pl.BlockSpec((2, tile_b), lambda i: (0, i)),
        compiler_params=pltpu.CompilerParams(
            dimension_semantics=("parallel",)),
        cost_estimate=cost,
    )(x_t, w1, b1_col, wd, bd)

    if pb != B:
        out_t = out_t[:, :B]
    return out_t


def policy_forward(x, w1, b1, w2, b2, *, tile_b=None):
    """Torch-layout forward pass of the Policy module.

    x : (B, 4) f32 observations
    w1: (128, 4) f32, b1: (128,) f32   -- torch-layout affine1
    w2: (2, 128) f32, b2: (2,)  f32    -- torch-layout affine2
    returns (B, 2) f32 action probabilities (rows sum to 1).
    """
    out_t = policy_forward_feature_major(x.T, w1, b1, w2, b2, tile_b=tile_b)
    return out_t.T                                  # (B, 2)


def init_params(key):
    """Deterministic init mimicking nn.Linear defaults, in torch layouts."""
    k1, k2, k3, k4 = jax.random.split(key, 4)
    bound1 = 1.0 / jnp.sqrt(4.0)
    bound2 = 1.0 / jnp.sqrt(128.0)
    w1 = jax.random.uniform(k1, (128, 4), jnp.float32, -bound1, bound1)
    b1 = jax.random.uniform(k2, (128,), jnp.float32, -bound1, bound1)
    w2 = jax.random.uniform(k3, (2, 128), jnp.float32, -bound2, bound2)
    b2 = jax.random.uniform(k4, (2,), jnp.float32, -bound2, bound2)
    return w1, b1, w2, b2


if __name__ == "__main__":
    key = jax.random.PRNGKey(0)
    kx, kp = jax.random.split(key)

    B = 8  # small batch of CartPole observations (4-dim state each)
    x = jax.random.normal(kx, (B, 4), dtype=jnp.float32)
    w1, b1, w2, b2 = init_params(kp)

    probs = policy_forward(x, w1, b1, w2, b2)
    probs = jax.block_until_ready(probs)

    # reference in plain JAX (eval-mode dropout == identity)
    h_ref = jnp.maximum(x @ w1.T + b1, 0.0)
    s_ref = h_ref @ w2.T + b2
    ref = jax.nn.softmax(s_ref, axis=1)

    assert probs.shape == (B, 2)
    assert jnp.allclose(probs, ref, atol=1e-5, rtol=1e-5)
    assert jnp.allclose(jnp.sum(probs, axis=1), 1.0, atol=1e-5)

    # also exercise a multi-tile batch to cover the grid path
    B2 = 300
    x2 = jax.random.normal(kx, (B2, 4), dtype=jnp.float32)
    probs2 = jax.block_until_ready(policy_forward(x2, w1, b1, w2, b2))
    h2 = jnp.maximum(x2 @ w1.T + b1, 0.0)
    ref2 = jax.nn.softmax(h2 @ w2.T + b2, axis=1)
    assert probs2.shape == (B2, 2)
    assert jnp.allclose(probs2, ref2, atol=1e-5, rtol=1e-5)

    print("KERNEL_OK")
</pallas_src>

<mosaic_0001>
module attributes {stable_mosaic.version = 11 : i64} {
  func.func @_policy_kernel(%arg0: i32, %arg1: memref<4x128xf32, #tpu.memory_space<vmem>>, %arg2: memref<128x4xf32, #tpu.memory_space<vmem>>, %arg3: memref<128x1xf32, #tpu.memory_space<vmem>>, %arg4: memref<1x128xf32, #tpu.memory_space<vmem>>, %arg5: memref<1x1xf32, #tpu.memory_space<smem>>, %arg6: memref<2x128xf32, #tpu.memory_space<vmem>>) attributes {dimension_semantics = [#tpu.dimension_semantics<parallel>], iteration_bounds = array<i64: 1>, scalar_prefetch = 0 : i64, scratch_operands = 0 : i64, tpu.core_type = #tpu.core_type<tc>, window_params = [{transform_indices = @transform_0, window_bounds = array<i64: 4, 128>}, {pipeline_mode = #tpu.pipeline_mode<synchronous>, transform_indices = @transform_1, window_bounds = array<i64: 128, 4>}, {pipeline_mode = #tpu.pipeline_mode<synchronous>, transform_indices = @transform_2, window_bounds = array<i64: 128, 1>}, {pipeline_mode = #tpu.pipeline_mode<synchronous>, transform_indices = @transform_3, window_bounds = array<i64: 1, 128>}, {transform_indices = @transform_4, window_bounds = array<i64: 1, 1>}, {transform_indices = @transform_5, window_bounds = array<i64: 2, 128>}]} {
    %c0 = arith.constant 0 : index
    %c0_0 = arith.constant 0 : index
    %0 = vector.load %arg1[%c0, %c0_0] : memref<4x128xf32, #tpu.memory_space<vmem>>, vector<4x128xf32>
    %c0_1 = arith.constant 0 : index
    %c0_2 = arith.constant 0 : index
    %1 = vector.load %arg2[%c0_1, %c0_2] : memref<128x4xf32, #tpu.memory_space<vmem>>, vector<128x4xf32>
    %c0_3 = arith.constant 0 : index
    %c0_4 = arith.constant 0 : index
    %2 = vector.load %arg3[%c0_3, %c0_4] : memref<128x1xf32, #tpu.memory_space<vmem>>, vector<128x1xf32>
    %3 = vector.extract_strided_slice %1 {offsets = [0, 0], sizes = [128, 1], strides = [1, 1]} : vector<128x4xf32> to vector<128x1xf32>
    %4 = vector.extract_strided_slice %0 {offsets = [0, 0], sizes = [1, 128], strides = [1, 1]} : vector<4x128xf32> to vector<1x128xf32>
    %5 = vector.broadcast %3 : vector<128x1xf32> to vector<128x128xf32>
    %6 = vector.broadcast %4 : vector<1x128xf32> to vector<128x128xf32>
    %7 = arith.mulf %5, %6 : vector<128x128xf32>
    %8 = vector.broadcast %2 : vector<128x1xf32> to vector<128x128xf32>
    %9 = arith.addf %8, %7 : vector<128x128xf32>
    %10 = vector.extract_strided_slice %1 {offsets = [0, 1], sizes = [128, 1], strides = [1, 1]} : vector<128x4xf32> to vector<128x1xf32>
    %11 = vector.extract_strided_slice %0 {offsets = [1, 0], sizes = [1, 128], strides = [1, 1]} : vector<4x128xf32> to vector<1x128xf32>
    %12 = vector.broadcast %10 : vector<128x1xf32> to vector<128x128xf32>
    %13 = vector.broadcast %11 : vector<1x128xf32> to vector<128x128xf32>
    %14 = arith.mulf %12, %13 : vector<128x128xf32>
    %15 = arith.addf %9, %14 : vector<128x128xf32>
    %16 = vector.extract_strided_slice %1 {offsets = [0, 2], sizes = [128, 1], strides = [1, 1]} : vector<128x4xf32> to vector<128x1xf32>
    %17 = vector.extract_strided_slice %0 {offsets = [2, 0], sizes = [1, 128], strides = [1, 1]} : vector<4x128xf32> to vector<1x128xf32>
    %18 = vector.broadcast %16 : vector<128x1xf32> to vector<128x128xf32>
    %19 = vector.broadcast %17 : vector<1x128xf32> to vector<128x128xf32>
    %20 = arith.mulf %18, %19 : vector<128x128xf32>
    %21 = arith.addf %15, %20 : vector<128x128xf32>
    %22 = vector.extract_strided_slice %1 {offsets = [0, 3], sizes = [128, 1], strides = [1, 1]} : vector<128x4xf32> to vector<128x1xf32>
    %23 = vector.extract_strided_slice %0 {offsets = [3, 0], sizes = [1, 128], strides = [1, 1]} : vector<4x128xf32> to vector<1x128xf32>
    %24 = vector.broadcast %22 : vector<128x1xf32> to vector<128x128xf32>
    %25 = vector.broadcast %23 : vector<1x128xf32> to vector<128x128xf32>
    %26 = arith.mulf %24, %25 : vector<128x128xf32>
    %27 = arith.addf %21, %26 : vector<128x128xf32>
    %cst = arith.constant 0.000000e+00 : f32
    %28 = vector.broadcast %cst : f32 to vector<128x128xf32>
    %29 = arith.maximumf %27, %28 : vector<128x128xf32>
    %c0_5 = arith.constant 0 : index
    %c0_6 = arith.constant 0 : index
    %30 = vector.load %arg4[%c0_5, %c0_6] : memref<1x128xf32, #tpu.memory_space<vmem>>, vector<1x128xf32>
    %cst_7 = arith.constant dense<0.000000e+00> : vector<1x128xf32>
    %31 = tpu.matmul %30, %29, %cst_7 {dimension_numbers = #tpu.dot_dimension_numbers<[1], [0], [0], [1], [0, 0, 1, 1], [], []>} : vector<1x128xf32>, vector<128x128xf32>, vector<1x128xf32> -> vector<1x128xf32>
    %c0_8 = arith.constant 0 : index
    %c0_9 = arith.constant 0 : index
    %32 = memref.load %arg5[%c0_8, %c0_9] : memref<1x1xf32, #tpu.memory_space<smem>>
    %33 = vector.broadcast %32 : f32 to vector<1x128xf32>
    %34 = arith.addf %31, %33 : vector<1x128xf32>
    %35 = arith.negf %34 : vector<1x128xf32>
    %36 = math.exp %35 : vector<1x128xf32>
    %cst_10 = arith.constant 1.000000e+00 : f32
    %37 = vector.broadcast %cst_10 : f32 to vector<1x128xf32>
    %38 = arith.addf %37, %36 : vector<1x128xf32>
    %39 = arith.divf %37, %38 : vector<1x128xf32>
    %cst_11 = arith.constant 1.000000e+00 : f32
    %40 = vector.broadcast %cst_11 : f32 to vector<1x128xf32>
    %41 = arith.subf %40, %39 : vector<1x128xf32>
    %42 = tpu.concatenate %39, %41 in 0 : vector<1x128xf32>, vector<1x128xf32> -> vector<2x128xf32>
    %c0_12 = arith.constant 0 : index
    %c0_13 = arith.constant 0 : index
    %43 = vector.load %arg6[%c0_12, %c0_13] : memref<2x128xf32, #tpu.memory_space<vmem>>, vector<2x128xf32>
    tpu.vector_store %arg6[%c0_12, %c0_13], %42 {strides = array<i32>} : memref<2x128xf32, #tpu.memory_space<vmem>>, vector<2x128xf32>,
    return
  }
  func.func @transform_0(%arg0: i32) -> (i32, i32) {
    %c0_i32 = arith.constant 0 : i32
    %c0_i32_0 = arith.constant 0 : i32
    return %c0_i32, %arg0 : i32, i32
  }
  func.func @transform_1(%arg0: i32) -> (i32, i32) {
    %c0_i32 = arith.constant 0 : i32
    %c0_i32_0 = arith.constant 0 : i32
    %c0_i32_1 = arith.constant 0 : i32
    return %c0_i32, %c0_i32_0 : i32, i32
  }
  func.func @transform_2(%arg0: i32) -> (i32, i32) {
    %c0_i32 = arith.constant 0 : i32
    %c0_i32_0 = arith.constant 0 : i32
    %c0_i32_1 = arith.constant 0 : i32
    return %c0_i32, %c0_i32_0 : i32, i32
  }
  func.func @transform_3(%arg0: i32) -> (i32, i32) {
    %c0_i32 = arith.constant 0 : i32
    %c0_i32_0 = arith.constant 0 : i32
    %c0_i32_1 = arith.constant 0 : i32
    return %c0_i32, %c0_i32_0 : i32, i32
  }
  func.func @transform_4(%arg0: i32) -> (i32, i32) {
    %c0_i32 = arith.constant 0 : i32
    %c0_i32_0 = arith.constant 0 : i32
    %c0_i32_1 = arith.constant 0 : i32
    return %c0_i32, %c0_i32_0 : i32, i32
  }
  func.func @transform_5(%arg0: i32) -> (i32, i32) {
    %c0_i32 = arith.constant 0 : i32
    %c0_i32_0 = arith.constant 0 : i32
    return %c0_i32, %arg0 : i32, i32
  }
}

</mosaic_0001>

<bundles_post_ra>
// kernel: tpu_custom_call.1
= control target key start
LH: loop header
LB: loop body
LE: loop exit
PB: predicated region body
PF: predicated region fallthrough
CT: control target
= control target key end

     0   :  { %v823_v2 = vmov 2   ;;  %v824_v3 = vmov 0   ;;  %s1254_s0 = inlined_call_operand.vmem [shape: f32[4,128], index: 0, kind: input, shape index: {}]   ;;  %s1255_s1 = inlined_call_operand.vmem [shape: f32[128,4], index: 1, kind: input, shape index: {}]   ;;  %s1256_s2 = inlined_call_operand.vmem [shape: f32[128,1], index: 2, kind: input, shape index: {}]   ;;  %s1257_s3 = inlined_call_operand.vmem [shape: f32[1,128], index: 3, kind: input, shape index: {}]   ;;  %s1258_s4 = inlined_call_operand.<no memory space> [shape: f32[1,1], index: 4, kind: input, shape index: {}]   ;;  %s1259_s5 = inlined_call_operand.hbm [shape: f32[2,128], index: 5, kind: output, shape index: {}]  }
   0x1   :  { %v39_v0 = vld [vmem:[%s1256_s2] sm:$0xff]  ;;  %v867_v1 = vld [vmem:[%s1255_s1 + $0x10] sm:$0xff]  ;;  %760 = vset.pattern.permute.xlu0 %v823_v2  ;;  %752 = vset.pattern.permute.xlu1 %v824_v3  ;;  %v40_v4 = vld [vmem:[%s1256_s2 + $0x8] sm:$0xff] }
   0x2   :  { %157 = vperm.xlu1 %752, %v39_v0   ;;  %360 = vperm.xlu0 %760, %v867_v1   ;;  %v878_v5 = vld [vmem:[%s1255_s1 + $0x30] sm:$0xff]  ;;  %v889_v7 = vld [vmem:[%s1255_s1 + $0x8] sm:$0xff] }
   0x3   :  { %v884_v6 = vld [vmem:[%s1255_s1 + $0x50] sm:$0xff] }
   0x6   :  { %162 = vperm.xlu1 %752, %v40_v4   ;;  %376 = vperm.xlu0 %760, %v878_v5  }
   0x7   :  { %11 = vsyncpa [#allocation4], 0  ;;  %v825_v8 = vmov 1   ;;  %v23_v9 = vld [vmem:[%s1255_s1] sm:$0xff]  ;;  %v26_v10 = vld [vmem:[%s1255_s1 + $0x18] sm:$0xff]  ;;  %v826_v16 = vmov 3   ;;  %v135_v0 = vlaneseq }
   0x8   :  { %v41_v11 = vld [vmem:[%s1256_s2 + $0x10] sm:$0xff]  ;;  %v42_v12 = vld [vmem:[%s1256_s2 + $0x18] sm:$0xff]  ;;  %v44_v13 = vld [vmem:[%s1256_s2 + $0x28] sm:$0xff]  ;;  %v827_v28 = vmov 0.0|0.0   ;;  %vm828_vm0 = vmmov 0   ;;  %s830_s10 = smov [#allocation3]  }
   0x9   :  { %v919_v14 = vld [vmem:[%s1255_s1 + $0x38] sm:$0xff]  ;;  %v45_v15 = vld [vmem:[%s1256_s2 + $0x30] sm:$0xff]  ;;  %v48_v17 = vld [vmem:[%s1256_s2 + $0x48] sm:$0xff]  ;;  %720 = vmatprep.subr.bf16.mxu0 %v827_v28  ;;  %s659_s11 = sshll.u32 %s830_s10, 4  ;;  %vm650_vm1 = vcmask 1040384   ;;  %s660_s11 = int_to_ptr.vmem [resolvable:$true] %s659_s11 }
   0xa   :  { %753 = vset.pattern.permute.xlu1 %v825_v8  ;;  %392 = vperm.xlu0 %760, %v884_v6   ;;  %v27_v18 = vld [vmem:[%s1255_s1 + $0x20] sm:$0xff]  ;;  %v937_v19 = vld [vmem:[%s1255_s1 + $0x58] sm:$0xff]  ;;  %v28_v20 = vld [vmem:[%s1255_s1 + $0x28] sm:$0xff]  ;;  %p804_p1 = scmp.lt.s32.totalorder %s660_s11, %s660_s11 }
   0xb   :  { %256 = vperm.xlu1 %753, %v889_v7   ;;  %v49_v21 = vld [vmem:[%s1256_s2 + $0x50] sm:$0xff]  ;;  %v52_v22 = vld [vmem:[%s1256_s2 + $0x68] sm:$0xff]  ;;  %v953_v23 = vld [vmem:[%s1255_s1 + $0x78] sm:$0xff] }
   0xc   :  { %v43_v24 = vld [vmem:[%s1256_s2 + $0x20] sm:$0xff]  ;;  %v53_v25 = vld [vmem:[%s1256_s2 + $0x70] sm:$0xff]  ;;  %v46_v27 = vld [vmem:[%s1256_s2 + $0x38] sm:$0xff] }
   0xd   :  { %v974_v26 = vld [vmem:[%s1255_s1 + $0x70] sm:$0xff]  ;;  %v31_v29 = vld [vmem:[%s1255_s1 + $0x40] sm:$0xff]  ;;  %v32_v30 = vld [vmem:[%s1255_s1 + $0x48] sm:$0xff] }
   0xe   :  { %781 = vset.pattern.permute.xlu0 %v824_v3  ;;  %v1001_v31 = vld [vmem:[%s1255_s1 + $0x68] sm:$0xff]  ;;  %v47_v32 = vld [vmem:[%s1256_s2 + $0x40] sm:$0xff]  ;;  %v50_v44 = vld [vmem:[%s1256_s2 + $0x58] sm:$0xff] }
   0xf   :  { %754 = vset.pattern.permute.xlu1 %v824_v3  ;;  %57 = vperm.xlu0 %781, %v23_v9   ;;  %v1059_v52 = vld [vmem:[%s1255_s1 + $0x60] sm:$0xff] }
  0x10   :  { %67 = vperm.xlu1 %754, %v867_v1   ;;  %v51_v59 = vld [vmem:[%s1256_s2 + $0x60] sm:$0xff] }
  0x13   :  { %62 = vperm.xlu0 %781, %v889_v7  }
  0x14   :  { %755 = vset.pattern.permute.xlu1 %v823_v2 }
  0x15   :  { %352 = vperm.xlu1 %755, %v23_v9  }
  0x17   :  { %72 = vperm.xlu0 %781, %v26_v10  }
  0x19   :  { %356 = vperm.xlu1 %755, %v889_v7  }
  0x1b   :  { %167 = vperm.xlu0 %781, %v41_v11  }
  0x1d   :  { %756 = vset.pattern.permute.xlu1 %v824_v3 }
  0x1e   :  { %172 = vperm.xlu1 %756, %v42_v12  }
  0x1f   :  { %182 = vperm.xlu0 %781, %v44_v13  }
  0x22   :  { %757 = vset.pattern.permute.xlu1 %v825_v8 }
  0x23   :  { %92 = vperm.xlu0 %781, %v919_v14   ;;  %264 = vperm.xlu1 %757, %v26_v10  }
  0x27   :  { %187 = vperm.xlu0 %781, %v45_v15   ;;  %758 = vset.pattern.permute.xlu1 %v826_v16 }
  0x28   :  { %452 = vperm.xlu1 %758, %v23_v9  }
  0x2b   :  { %202 = vperm.xlu0 %781, %v48_v17  }
  0x2c   :  { %759 = vset.pattern.permute.xlu1 %v824_v3 }
  0x2d   :  { %77 = vperm.xlu1 %759, %v27_v18  }
  0x2f   :  { %112 = vperm.xlu0 %781, %v937_v19  }
  0x31   :  { %82 = vperm.xlu1 %759, %v28_v20  }
  0x33   :  { %207 = vperm.xlu0 %781, %v49_v21  }
  0x35   :  { %761 = vset.pattern.permute.xlu1 %v823_v2 }
  0x36   :  { %364 = vperm.xlu1 %761, %v26_v10  }
  0x37   :  { %222 = vperm.xlu0 %781, %v52_v22  }
  0x3a   :  { %762 = vset.pattern.permute.xlu1 %v824_v3 }
  0x3b   :  { %132 = vperm.xlu0 %781, %v953_v23   ;;  %177 = vperm.xlu1 %762, %v43_v24  }
  0x3f   :  { %227 = vperm.xlu0 %781, %v53_v25   ;;  %763 = vset.pattern.permute.xlu1 %v825_v8 }
  0x40   :  { %268 = vperm.xlu1 %763, %v27_v18  }
  0x43   :  { %788 = vset.pattern.permute.xlu0 %v825_v8 }
  0x44   :  { %252 = vperm.xlu0 %788, %v23_v9   ;;  %272 = vperm.xlu1 %763, %v28_v20  }
  0x48   :  { %260 = vperm.xlu0 %788, %v867_v1   ;;  %764 = vset.pattern.permute.xlu1 %v826_v16 }
  0x49   :  { %464 = vperm.xlu1 %764, %v26_v10   ;;  %v22_v10 = vld [vmem:[%s1254_s0] sm:$0xf] }
  0x4c   :  { %276 = vperm.xlu0 %788, %v878_v5  }
  0x4d   :  { %765 = vset.pattern.permute.xlu1 %v824_v3 }
  0x4e   :  { %87 = vperm.xlu1 %765, %v878_v5  }
  0x50   :  { %292 = vperm.xlu0 %788, %v884_v6  }
  0x52   :  { %766 = vset.pattern.permute.xlu1 %v823_v2 }
  0x53   :  { %368 = vperm.xlu1 %766, %v27_v18  }
  0x54   :  { %308 = vperm.xlu0 %788, %v974_v26  }
  0x57   :  { %372 = vperm.xlu1 %766, %v28_v20  }
  0x58   :  { %790 = vset.pattern.permute.xlu0 %v826_v16 }
  0x59   :  { %456 = vperm.xlu0 %790, %v889_v7  }
  0x5b   :  { %767 = vset.pattern.permute.xlu1 %v824_v3 }
  0x5c   :  { %192 = vperm.xlu1 %767, %v46_v27  }
  0x5d   :  { %460 = vperm.xlu0 %790, %v867_v1  }
  0x60   :  { %768 = vset.pattern.permute.xlu1 %v825_v8 }
  0x61   :  { %472 = vperm.xlu0 %790, %v28_v20   ;;  %280 = vperm.xlu1 %768, %v919_v14  }
  0x65   :  { %476 = vperm.xlu0 %790, %v878_v5   ;;  %769 = vset.pattern.permute.xlu1 %v826_v16  ;;  %v136_v5 = vshrl.u32 %v135_v0, 7 }
  0x66   :  { %468 = vperm.xlu1 %769, %v27_v18  }
  0x67   :  { %v317_v11 = vsub.s32 1, %v136_v5  ;;  %v417_v15 = vsub.s32 2, %v136_v5 }
  0x69   :  { %488 = vperm.xlu0 %790, %v32_v30   ;;  %v1106_v17 = vrot.slane %v22_v10, %v317_v11  ;;  %v1110_v22 = vrot.slane %v22_v10, %v417_v15 }
  0x6a   :  { %770 = vset.pattern.permute.xlu1 %v824_v3 }
  0x6b   :  { %97 = vperm.xlu1 %770, %v31_v29  }
  0x6d   :  { %492 = vperm.xlu0 %790, %v884_v6  }
  0x6f   :  { %102 = vperm.xlu1 %770, %v32_v30  }
  0x71   :  { %504 = vperm.xlu0 %790, %v1001_v31  }
  0x73   :  { %771 = vset.pattern.permute.xlu1 %v823_v2 }
  0x74   :  { %380 = vperm.xlu1 %771, %v919_v14  }
  0x75   :  { %508 = vperm.xlu0 %790, %v974_v26  }
  0x78   :  { %772 = vset.pattern.permute.xlu1 %v824_v3 }
  0x79   :  { %197 = vperm.xlu1 %772, %v47_v32  }
  0x7d   :  { %773 = vset.pattern.permute.xlu1 %v825_v8 }
  0x7e   :  { %284 = vperm.xlu1 %773, %v31_v29  }
  0x81   :  { %v1012_v33 = vpop.permute.xlu1 %157  ;;  %v1014_v34 = vpop.permute.xlu0 %360 }
  0x82   :  { %288 = vperm.xlu1 %773, %v32_v30  }
  0x85   :  { %v1016_v35 = vpop.permute.xlu1 %162  ;;  %v1018_v36 = vpop.permute.xlu0 %376 }
  0x86   :  { %774 = vset.pattern.permute.xlu1 %v826_v16 }
  0x87   :  { %480 = vperm.xlu1 %774, %v919_v14  }
  0x89   :  { %v1022_v37 = vpop.permute.xlu0 %392 }
  0x8a   :  { %v1024_v38 = vpop.permute.xlu1 %256 }
  0x8b   :  { %775 = vset.pattern.permute.xlu1 %v824_v3 }
  0x8c   :  { %107 = vperm.xlu1 %775, %v884_v6   ;;  %v137_v6 = vsub.s32 0, %v136_v5 }
  0x8e   :  { %v58_v39 = vpop.permute.xlu0 %57  ;;  %v1102_v12 = vrot.slane %v22_v10, %v137_v6 }
  0x8f   :  { %v1028_v40 = vpop.permute.xlu1 %67 }
  0x90   :  { %776 = vset.pattern.permute.xlu1 %v823_v2  ;;  %v139_v18 = vmul.f32 %v1102_v12, %v58_v39  ;;  %v425_v39 = vmul.f32 %v1110_v22, %v1018_v36  ;;  %v320_v36 = vmul.f32 %v1106_v17, %v1024_v38 }
  0x91   :  { %384 = vperm.xlu1 %776, %v31_v29  }
  0x92   :  { %v1031_v41 = vpop.permute.xlu0 %62  ;;  %v235_v27 = vadd.f32 %v1012_v33, %v139_v18 }
  0x94   :  { %v1033_v42 = vpop.permute.xlu1 %352 }
  0x95   :  { %388 = vperm.xlu1 %776, %v32_v30   ;;  %v517_v30 = vsub.s32 3, %v136_v5 }
  0x96   :  { %v1035_v43 = vpop.permute.xlu0 %72 }
  0x97   :  { %v142_v0 = vmul.f32 %v1102_v12, %v1035_v43  ;;  %v1128_v5 = vrot.slane %v22_v10, %v517_v30 }
  0x98   :  { %v1040_v45 = vpop.permute.xlu1 %356 }
  0x99   :  { %777 = vset.pattern.permute.xlu1 %v824_v3 }
  0x9a   :  { %v1043_v46 = vpop.permute.xlu0 %167  ;;  %212 = vperm.xlu1 %777, %v50_v44  }
  0x9d   :  { %v1045_v47 = vpop.permute.xlu1 %172 }
  0x9e   :  { %778 = vset.pattern.permute.xlu1 %v825_v8  ;;  %v1048_v48 = vpop.permute.xlu0 %182  ;;  %v238_v38 = vadd.f32 %v1045_v47, %v142_v0 }
  0x9f   :  { %296 = vperm.xlu1 %778, %v937_v19  }
  0xa2   :  { %v1051_v49 = vpop.permute.xlu1 %264  ;;  %v1053_v50 = vpop.permute.xlu0 %92 }
  0xa3   :  { %779 = vset.pattern.permute.xlu1 %v826_v16 }
  0xa4   :  { %484 = vperm.xlu1 %779, %v31_v29   ;;  %v140_v29 = vmul.f32 %v1102_v12, %v1031_v41  ;;  %v419_v41 = vmul.f32 %v1110_v22, %v1033_v42  ;;  %v420_v42 = vmul.f32 %v1110_v22, %v1040_v45  ;;  %v421_v45 = vmul.f32 %v1110_v22, %v1014_v34 }
  0xa6   :  { %v188_v51 = vpop.permute.xlu0 %187  ;;  %v236_v33 = vadd.f32 %v1016_v35, %v140_v29  ;;  %v141_v35 = vmul.f32 %v1102_v12, %v1028_v40 }
  0xa7   :  { %v1061_v53 = vpop.permute.xlu1 %452 }
  0xa8   :  { %780 = vset.pattern.permute.xlu1 %v824_v3  ;;  %v519_v40 = vmul.f32 %v1128_v5, %v1061_v53 }
  0xa9   :  { %117 = vperm.xlu1 %780, %v1059_v52  }
  0xaa   :  { %v1065_v54 = vpop.permute.xlu0 %202 }
  0xac   :  { %v1067_v55 = vpop.permute.xlu1 %77 }
  0xad   :  { %122 = vperm.xlu1 %780, %v1001_v31  }
  0xae   :  { %v1070_v56 = vpop.permute.xlu0 %112 }
  0xb0   :  { %v1072_v57 = vpop.permute.xlu1 %82 }
  0xb1   :  { %782 = vset.pattern.permute.xlu1 %v823_v2  ;;  %v144_v53 = vmul.f32 %v1102_v12, %v1072_v57 }
  0xb2   :  { %396 = vperm.xlu1 %782, %v937_v19   ;;  %v1076_v58 = vpop.permute.xlu0 %207 }
  0xb3   :  { %v240_v57 = vadd.f32 %v1048_v48, %v144_v53 }
  0xb5   :  { %v365_v60 = vpop.permute.xlu1 %364 }
  0xb6   :  { %783 = vset.pattern.permute.xlu1 %v824_v3  ;;  %v1082_v61 = vpop.permute.xlu0 %222  ;;  %v422_v18 = vmul.f32 %v1110_v22, %v365_v60 }
  0xb7   :  { %217 = vperm.xlu1 %783, %v51_v59  }
  0xba   :  { %v1084_v62 = vpop.permute.xlu1 %177  ;;  %v1086_v63 = vpop.permute.xlu0 %132 }
  0xbb   :  { %784 = vset.pattern.permute.xlu1 %v825_v8 }
  0xbc   :  { %300 = vperm.xlu1 %784, %v1059_v52  }
  0xbe   :  { %v1090_v1 = vpop.permute.xlu0 %227 }
  0xbf   :  { %v1092_v4 = vpop.permute.xlu1 %268 }
  0xc0   :  { %304 = vperm.xlu1 %784, %v1001_v31  }
  0xc3   :  { %v253_v7 = vpop.permute.xlu0 %252  ;;  %v1095_v9 = vpop.permute.xlu1 %272 }
  0xc4   :  { %785 = vset.pattern.permute.xlu1 %v826_v16  ;;  %v324_v0 = vmul.f32 %v1106_v17, %v1095_v9 }
  0xc5   :  { %496 = vperm.xlu1 %785, %v937_v19   ;;  %v319_v19 = vmul.f32 %v1106_v17, %v253_v7 }
  0xc6   :  { %v340_v9 = vadd.f32 %v324_v0, %v240_v57 }
  0xc7   :  { %v261_v13 = vpop.permute.xlu0 %260  ;;  %v335_v59 = vadd.f32 %v319_v19, %v235_v27  ;;  %v237_v19 = vadd.f32 %v1043_v46, %v141_v35 }
  0xc8   :  { %v465_v14 = vpop.permute.xlu1 %464  ;;  %v321_v15 = vmul.f32 %v1106_v17, %v261_v13 }
  0xc9   :  { %786 = vset.pattern.permute.xlu1 %v824_v3  ;;  %v435_v10 = vadd.f32 %v419_v41, %v335_v59 }
  0xca   :  { %127 = vperm.xlu1 %786, %v974_v26  }
  0xcb   :  { %v277_v20 = vpop.permute.xlu0 %276  ;;  %v535_v27 = vadd.f32 %v519_v40, %v435_v10 }
  0xcc   :  { %v325_v24 = vmul.f32 %v1106_v17, %v277_v20  ;;  %v336_v20 = vadd.f32 %v320_v36, %v236_v33 }
  0xcd   :  { %v88_v21 = vpop.permute.xlu1 %87  ;;  %v551_v59 = vmax.f32 %v535_v27, 0.0 }
  0xce   :  { %v145_v25 = vmul.f32 %v1102_v12, %v88_v21  ;;  %787 = vset.pattern.permute.xlu1 %v823_v2  ;;  %v522_v21 = vmul.f32 %v1128_v5, %v465_v14  ;;  %v436_v47 = vadd.f32 %v420_v42, %v336_v20 }
  0xcf   :  { %400 = vperm.xlu1 %787, %v1059_v52   ;;  %v1119_v32 = vpop.permute.xlu0 %292 }
  0xd0   :  { %v241_v44 = vadd.f32 %v188_v51, %v145_v25  ;;  %v322_v51 = vmul.f32 %v1106_v17, %v1051_v49  ;;  %v337_v25 = vadd.f32 %v321_v15, %v237_v19  ;;  %v329_v0 = vmul.f32 %v1106_v17, %v1119_v32 }
  0xd2   :  { %v341_v6 = vadd.f32 %v325_v24, %v241_v44  ;;  %v369_v7 = vpop.permute.xlu1 %368  ;;  %v338_v13 = vadd.f32 %v322_v51, %v238_v38  ;;  %v437_v44 = vadd.f32 %v421_v45, %v337_v25 }
  0xd3   :  { %404 = vperm.xlu1 %787, %v1001_v31   ;;  %v1131_v11 = vpop.permute.xlu0 %308  ;;  %v54_v31 = vld [vmem:[%s1256_s2 + $0x78] sm:$0xff] }
  0xd4   :  { %v1137_v43 = vadd.f32 %v425_v39, %v341_v6  ;;  %v438_v29 = vadd.f32 %v422_v18, %v338_v13  ;;  %v143_v6 = vmul.f32 %v1102_v12, %v1067_v55  ;;  %v423_v55 = vmul.f32 %v1110_v22, %v369_v7 }
  0xd6   :  { %v373_v49 = vpop.permute.xlu1 %372  ;;  %v239_v42 = vadd.f32 %v1084_v62, %v143_v6 }
  0xd7   :  { %789 = vset.pattern.permute.xlu1 %v824_v3  ;;  %v538_v3 = vadd.f32 %v522_v21, %v438_v29  ;;  %v424_v36 = vmul.f32 %v1110_v22, %v373_v49 }
  0xd8   :  { %v457_v24 = vpop.permute.xlu0 %456  ;;  %232 = vperm.xlu1 %789, %v54_v31  }
  0xd9   :  { %v520_v60 = vmul.f32 %v1128_v5, %v457_v24  ;;  %v554_v10 = vmax.f32 %v538_v3, 0.0  ;;  %v440_v38 = vadd.f32 %v424_v36, %v340_v9  ;;  %v829_v24 = vmov 0.0  }
  0xda   :  { %717 = vmatprep.mubr.msk.f32.mxu0 %vm828_vm0, %v829_v24 }
  0xdb   :  { %v536_v46 = vadd.f32 %v520_v60, %v436_v47  ;;  %v193_v30 = vpop.permute.xlu1 %192  ;;  %v146_v47 = vmul.f32 %v1102_v12, %v1053_v50 }
  0xdc   :  { %v461_v39 = vpop.permute.xlu0 %460  ;;  %791 = vset.pattern.permute.xlu1 %v825_v8  ;;  %v323_v8 = vmul.f32 %v1106_v17, %v1092_v4 }
  0xdd   :  { %v552_v34 = vmax.f32 %v536_v46, 0.0  ;;  %v521_v14 = vmul.f32 %v1128_v5, %v461_v39  ;;  %312 = vperm.xlu1 %791, %v953_v23   ;;  %v242_v29 = vadd.f32 %v193_v30, %v146_v47  ;;  %v150_v47 = vmul.f32 %v1102_v12, %v1070_v56 }
  0xde   :  { %v339_v4 = vadd.f32 %v323_v8, %v239_v42 }
  0xdf   :  { %v537_v33 = vadd.f32 %v521_v14, %v437_v44  ;;  %v721_v41 = vpack.c.bf16 %v552_v34, %v551_v59 }
  0xe0   :  { %v473_v51 = vpop.permute.xlu0 %472  ;;  %v281_v35 = vpop.permute.xlu1 %280  ;;  %v439_v62 = vadd.f32 %v423_v55, %v339_v4 }
  0xe1   :  { %v553_v15 = vmax.f32 %v537_v33, 0.0  ;;  %792 = vset.pattern.permute.xlu1 %v826_v16  ;;  %722 = vmatpush3.bf16.msra.mxu0 %v721_v41  ;;  %v524_v31 = vmul.f32 %v1128_v5, %v473_v51  ;;  %v326_v60 = vmul.f32 %v1106_v17, %v281_v35  ;;  %v429_v41 = vmul.f32 %v1110_v22, %v1022_v37 }
  0xe2   :  { %500 = vperm.xlu1 %792, %v1059_v52   ;;  %723 = vmatprep.subr.bf16.mxu0 %v827_v28 }
  0xe3   :  { %v724_v48 = vpack.c.bf16 %v554_v10, %v553_v15  ;;  %v540_v49 = vadd.f32 %v524_v31, %v440_v38  ;;  %v342_v53 = vadd.f32 %v326_v60, %v242_v29 }
  0xe4   :  { %v477_v25 = vpop.permute.xlu0 %476 }
  0xe5   :  { %v469_v18 = vpop.permute.xlu1 %468  ;;  %725 = vmatpush3.bf16.msra.mxu0 %v724_v48  ;;  %v556_v19 = vmax.f32 %v540_v49, 0.0 }
  0xe6   :  { %v523_v20 = vmul.f32 %v1128_v5, %v469_v18  ;;  %793 = vset.pattern.permute.xlu1 %v823_v2  ;;  %726 = vmatprep.subr.bf16.mxu0 %v827_v28 }
  0xe7   :  { %408 = vperm.xlu1 %793, %v974_v26  }
  0xe8   :  { %v539_v7 = vadd.f32 %v523_v20, %v439_v62  ;;  %v489_v55 = vpop.permute.xlu0 %488 }
  0xe9   :  { %v528_v48 = vmul.f32 %v1128_v5, %v489_v55 }
  0xea   :  { %v555_v52 = vmax.f32 %v539_v7, 0.0  ;;  %v98_v40 = vpop.permute.xlu1 %97 }
  0xeb   :  { %412 = vperm.xlu1 %793, %v953_v23  }
  0xec   :  { %v727_v45 = vpack.c.bf16 %v556_v19, %v555_v52 }
  0xee   :  { %v103_v13 = vpop.permute.xlu1 %102  ;;  %728 = vmatpush3.bf16.msra.mxu0 %v727_v45 }
  0xef   :  { %794 = vset.pattern.permute.xlu1 %v826_v16  ;;  %729 = vmatprep.subr.bf16.mxu0 %v827_v28  ;;  %v525_v16 = vmul.f32 %v1128_v5, %v477_v25  ;;  %v148_v51 = vmul.f32 %v1102_v12, %v103_v13 }
  0xf0   :  { %512 = vperm.xlu1 %794, %v953_v23  }
  0xf1   :  { %v541_v3 = vadd.f32 %v525_v16, %v1137_v43  ;;  %v244_v42 = vadd.f32 %v1065_v54, %v148_v51 }
  0xf3   :  { %v381_v2 = vpop.permute.xlu1 %380  ;;  %v557_v14 = vmax.f32 %v541_v3, 0.0 }
  0xf4   :  { %v426_v46 = vmul.f32 %v1110_v22, %v381_v2 }
  0xf6   :  { %v442_v39 = vadd.f32 %v426_v46, %v342_v53 }
  0xf8   :  { %v198_v21 = vpop.permute.xlu1 %197 }
  0xfd   :  { %v285_v26 = vpop.permute.xlu1 %284 }
  0xfe   :  { %v327_v15 = vmul.f32 %v1106_v17, %v285_v26  ;;  %v493_v26 = vpop.permute.xlu0 %492 }
 0x101   :  { %v289_v27 = vpop.permute.xlu1 %288 }
 0x102   :  { %v328_v32 = vmul.f32 %v1106_v17, %v289_v27  ;;  %v529_v27 = vmul.f32 %v1128_v5, %v493_v26 }
 0x104   :  { %v344_v37 = vadd.f32 %v328_v32, %v244_v42 }
 0x106   :  { %v481_v23 = vpop.permute.xlu1 %480 }
 0x107   :  { %v526_v34 = vmul.f32 %v1128_v5, %v481_v23 }
 0x109   :  { %v542_v44 = vadd.f32 %v526_v34, %v442_v39 }
 0x10b   :  { %v558_v59 = vmax.f32 %v542_v44, 0.0  ;;  %v108_v50 = vpop.permute.xlu1 %107 }
 0x10c   :  { %v149_v30 = vmul.f32 %v1102_v12, %v108_v50 }
 0x10d   :  { %v730_v6 = vpack.c.bf16 %v558_v59, %v557_v14 }
 0x10e   :  { %v245_v33 = vadd.f32 %v1076_v58, %v149_v30  ;;  %v147_v58 = vmul.f32 %v1102_v12, %v98_v40 }
 0x10f   :  { %731 = vmatpush3.bf16.msra.mxu0 %v730_v6 }
 0x110   :  { %v345_v43 = vadd.f32 %v329_v0, %v245_v33  ;;  %v385_v57 = vpop.permute.xlu1 %384  ;;  %732 = vmatprep.subr.bf16.mxu0 %v827_v28  ;;  %v243_v31 = vadd.f32 %v198_v21, %v147_v58 }
 0x111   :  { %v427_v4 = vmul.f32 %v1110_v22, %v385_v57 }
 0x112   :  { %v445_v8 = vadd.f32 %v429_v41, %v345_v43  ;;  %v343_v18 = vadd.f32 %v327_v15, %v243_v31 }
 0x114   :  { %v389_v36 = vpop.permute.xlu1 %388  ;;  %v443_v49 = vadd.f32 %v427_v4, %v343_v18  ;;  %v545_v23 = vadd.f32 %v529_v27, %v445_v8 }
 0x115   :  { %v428_v10 = vmul.f32 %v1110_v22, %v389_v36 }
 0x116   :  { %v561_v44 = vmax.f32 %v545_v23, 0.0 }
 0x117   :  { %v444_v38 = vadd.f32 %v428_v10, %v344_v37 }
 0x119   :  { %v213_v35 = vpop.permute.xlu1 %212  ;;  %v544_v20 = vadd.f32 %v528_v48, %v444_v38 }
 0x11a   :  { %v246_v29 = vadd.f32 %v213_v35, %v150_v47  ;;  %v505_v35 = vpop.permute.xlu0 %504 }
 0x11b   :  { %v560_v19 = vmax.f32 %v544_v20, 0.0  ;;  %v532_v10 = vmul.f32 %v1128_v5, %v505_v35 }
 0x11e   :  { %v297_v9 = vpop.permute.xlu1 %296 }
 0x11f   :  { %v330_v25 = vmul.f32 %v1106_v17, %v297_v9 }
 0x121   :  { %v346_v46 = vadd.f32 %v330_v25, %v246_v29 }
 0x123   :  { %v485_v62 = vpop.permute.xlu1 %484 }
 0x124   :  { %v527_v54 = vmul.f32 %v1128_v5, %v485_v62 }
 0x126   :  { %v543_v7 = vadd.f32 %v527_v54, %v443_v49  ;;  %v333_v49 = vmul.f32 %v1106_v17, %v1131_v11 }
 0x128   :  { %v559_v52 = vmax.f32 %v543_v7, 0.0  ;;  %v118_v40 = vpop.permute.xlu1 %117  ;;  %v154_v7 = vmul.f32 %v1102_v12, %v1086_v63 }
 0x129   :  { %v151_v57 = vmul.f32 %v1102_v12, %v118_v40 }
 0x12a   :  { %v733_v45 = vpack.c.bf16 %v560_v19, %v559_v52 }
 0x12c   :  { %v123_v13 = vpop.permute.xlu1 %122  ;;  %734 = vmatpush3.bf16.msra.mxu0 %v733_v45  ;;  %v509_v45 = vpop.permute.xlu0 %508 }
 0x12d   :  { %735 = vmatprep.subr.bf16.mxu0 %v827_v28  ;;  %v152_v30 = vmul.f32 %v1102_v12, %v123_v13  ;;  %v533_v11 = vmul.f32 %v1128_v5, %v509_v45 }
 0x12f   :  { %v248_v41 = vadd.f32 %v1082_v61, %v152_v30 }
 0x131   :  { %v397_v2 = vpop.permute.xlu1 %396 }
 0x132   :  { %v430_v16 = vmul.f32 %v1110_v22, %v397_v2 }
 0x134   :  { %v446_v3 = vadd.f32 %v430_v16, %v346_v46 }
 0x136   :  { %v218_v21 = vpop.permute.xlu1 %217 }
 0x137   :  { %v247_v32 = vadd.f32 %v218_v21, %v151_v57 }
 0x13b   :  { %v301_v24 = vpop.permute.xlu1 %300 }
 0x13c   :  { %v331_v8 = vmul.f32 %v1106_v17, %v301_v24 }
 0x13e   :  { %v347_v15 = vadd.f32 %v331_v8, %v247_v32 }
 0x13f   :  { %v305_v60 = vpop.permute.xlu1 %304 }
 0x140   :  { %v332_v33 = vmul.f32 %v1106_v17, %v305_v60 }
 0x142   :  { %v348_v36 = vadd.f32 %v332_v33, %v248_v41 }
 0x144   :  { %v497_v53 = vpop.permute.xlu1 %496 }
 0x145   :  { %v530_v39 = vmul.f32 %v1128_v5, %v497_v53 }
 0x147   :  { %v546_v34 = vadd.f32 %v530_v39, %v446_v3 }
 0x149   :  { %v562_v14 = vmax.f32 %v546_v34, 0.0  ;;  %v128_v59 = vpop.permute.xlu1 %127 }
 0x14a   :  { %v153_v9 = vmul.f32 %v1102_v12, %v128_v59 }
 0x14b   :  { %v736_v50 = vpack.c.bf16 %v562_v14, %v561_v44 }
 0x14c   :  { %v249_v4 = vadd.f32 %v1090_v1, %v153_v9 }
 0x14d   :  { %737 = vmatpush3.bf16.msra.mxu0 %v736_v50 }
 0x14e   :  { %v401_v56 = vpop.permute.xlu1 %400  ;;  %738 = vmatprep.subr.bf16.mxu0 %v827_v28  ;;  %v349_v52 = vadd.f32 %v333_v49, %v249_v4 }
 0x14f   :  { %v431_v42 = vmul.f32 %v1110_v22, %v401_v56 }
 0x151   :  { %v447_v61 = vadd.f32 %v431_v42, %v347_v15 }
 0x152   :  { %v405_v0 = vpop.permute.xlu1 %404 }
 0x153   :  { %v432_v43 = vmul.f32 %v1110_v22, %v405_v0 }
 0x155   :  { %v448_v58 = vadd.f32 %v432_v43, %v348_v36 }
 0x157   :  { %v233_v6 = vpop.permute.xlu1 %232  ;;  %v548_v55 = vadd.f32 %v532_v10, %v448_v58 }
 0x158   :  { %v250_v1 = vadd.f32 %v233_v6, %v154_v7 }
 0x159   :  { %v564_v38 = vmax.f32 %v548_v55, 0.0 }
 0x15c   :  { %v313_v51 = vpop.permute.xlu1 %312 }
 0x15d   :  { %v334_v19 = vmul.f32 %v1106_v17, %v313_v51 }
 0x15f   :  { %v350_v21 = vadd.f32 %v334_v19, %v250_v1 }
 0x161   :  { %v501_v37 = vpop.permute.xlu1 %500 }
 0x162   :  { %v531_v31 = vmul.f32 %v1128_v5, %v501_v37 }
 0x164   :  { %v547_v48 = vadd.f32 %v531_v31, %v447_v61 }
 0x166   :  { %v563_v18 = vmax.f32 %v547_v48, 0.0  ;;  %v409_v62 = vpop.permute.xlu1 %408 }
 0x167   :  { %v433_v20 = vmul.f32 %v1110_v22, %v409_v62 }
 0x168   :  { %v739_v54 = vpack.c.bf16 %v564_v38, %v563_v18 }
 0x169   :  { %v449_v13 = vadd.f32 %v433_v20, %v349_v52 }
 0x16a   :  { %v413_v40 = vpop.permute.xlu1 %412  ;;  %740 = vmatpush3.bf16.msra.mxu0 %v739_v54 }
 0x16b   :  { %741 = vmatprep.subr.bf16.mxu0 %v827_v28  ;;  %v434_v2 = vmul.f32 %v1110_v22, %v413_v40  ;;  %v549_v26 = vadd.f32 %v533_v11, %v449_v13  ;;  %v567_v28 = vld [vmem:[%s1257_s3] sm:$0x1]  ;;  %v569_v22 = vstv %s1258_s4  ;;  %s799_s3 = scalar_lea.vmem %s660_s11, 32 }
 0x16c   :  { %p800_p0 = scmp.ne.s32.totalorder %s660_s11, %s799_s3  ;;  %p805_p2 = scmp.lt.s32.totalorder %s799_s3, %s799_s3 }
 0x16d   :  { %v450_v47 = vadd.f32 %v434_v2, %v350_v21  ;;  %v565_v17 = vmax.f32 %v549_v26, 0.0 }
 0x16e   :  { %p806_p3 = por %p805_p2, %p804_p1 }
 0x16f   :  { %v513_v24 = vpop.permute.xlu1 %512 }
 0x170   :  { %v534_v63 = vmul.f32 %v1128_v5, %v513_v24  ;;  %p807_p4 = pnand %p806_p3, %p800_p0 }
 0x172   :  { %v550_v12 = vadd.f32 %v534_v63, %v450_v47 }
 0x174   :  { %v566_v25 = vmax.f32 %v550_v12, 0.0 }
 0x176   :  { %v742_v60 = vpack.c.bf16 %v566_v25, %v565_v17 }
 0x178   :  { %743 = vmatpush3.bf16.msra.mxu0 %v742_v60 }
 0x17b   :  { %718 = vmatmul.mubr.f32.vlgmr.msra.gmra.mrb[0].mxu0 %v567_v28 }
 0x24e   :  { %v636_v27 = vpop.f32.mrb[0].mxu0 }
 0x24f   :  { %v637_v29 = vadd.f32 %v636_v27, %v569_v22  ;;  %v719_v16 = vpop.f32.mrb[1].mxu0 }
 0x251   :  { %v667_v46 = vmul.f32 -1.442695, %v637_v29 }
 0x253   :  { %795 = vpow2.f32 %v667_v46 }
 0x25d   :  { %v796_v5 = vpop.eup %795 }
 0x25e   :  { %v643_v53 = vadd.f32 1.0, %v796_v5 }
 0x260   :  { %797 = vrcp.f32 %v643_v53 }
 0x26a   :  { %v798_v23 = vpop.eup %797 }
 0x26b   :  { %v646_v3 = vsub.f32 1.0, %v798_v23 }
 0x26d   :  { %v648_v39 = vrot.slane %v646_v3, 7 }
 0x26f   :  { %v651_v34 = vsel %vm650_vm1, %v798_v23, %v648_v39 }
 0x270   :  { %652 = vst [vmem:[#allocation3] sm:$0x3] %v651_v34 }
 0x271   :  { %810 = shalt.err (!%p807_p4)
}
 0x272   :  { %s811_s13 = scalar_lea.hbm %s1259_s5, 32 }
 0x273   :  { %p812_p5 = scmp.ne.s32.totalorder %s1259_s5, %s811_s13  ;;  %p815_p6 = scmp.lt.u32.totalorder %s811_s13, %s1259_s5 }
 0x275   :  { %p817_p7 = pnand %p815_p6, %p812_p5 }
 0x277   :  { %820 = shalt.err (!%p817_p7)
}
 0x278   :  { %662 = dma.vmem_to_hbm [thread:$0]  %s660_s11, 32, %s1259_s5, [#allocation4]  }
 0x279   :  { %821 = dma.done.wait [#allocation4], 32  }
 0x27a   :  { %822 = vsyncadd [#allocation4], 4294967264 }
 0x27b   :  { %666 = vsyncpa [#allocation4], 1 }

</bundles_post_ra>
